<compile_context>
chip_gen: v7x
topology: tpu7x:2x2x1
jax: 0.10.0
libtpu: 0.0.40
codegen_flags: <defaults>
</compile_context>

<pallas_src>
import functools

import numpy as np
import jax
import jax.numpy as jnp
from jax.experimental import pallas as pl
from jax.experimental.pallas import tpu as pltpu

BN_EPS = 1e-5


# --------------------------------------------------------------------------
# Fused Pallas kernel
# --------------------------------------------------------------------------
def _freq_upsampling_kernel(fu_ref, fd_ref, w1_ref, w2_ref, w3_ref, alpha_ref,
                            out_ref, *, F, T):
    f32 = jnp.float32
    cdtype = w1_ref.dtype                     # MXU operand dtype (f32 or bf16)
    cout = w2_ref.shape[0]
    L = fu_ref.shape[2]                       # lane width = Bc * F * T
    N = F * T                                 # per-image spatial extent
    Bc = L // N                               # batches folded into this block

    fu = fu_ref[0].astype(f32)                # (cin, L)
    fd = fd_ref[0].astype(f32)                # (cin, L)
    ones = jnp.ones((1, L), f32)

    # ---- Stage 1a: pconv1 (+BN1, bias folded as ones column) -> tanh -> * fd
    x1 = jnp.concatenate([fu, fd, ones], axis=0).astype(cdtype)     # (2cin+1, L)
    y1 = jnp.dot(w1_ref[...], x1, preferred_element_type=f32)       # (cin, L)
    y1 = jnp.tanh(y1) * fd

    # ---- Stage 1b: pconv2 (+BN2, bias folded) -> PReLU
    x2 = jnp.concatenate([y1, ones], axis=0).astype(cdtype)         # (cin+1, L)
    h = jnp.dot(w2_ref[...], x2, preferred_element_type=f32)        # (cout, L)
    alphas = alpha_ref[...]                                         # (5*cout, 1) f32
    a2 = alphas[:cout]
    h = jnp.where(h > 0, h, a2 * h)

    # ---- Stage 2: grouped ConvTranspose2d K=(7,1) S=(4,1) P=(2,0) O=(1,0)
    # along F (+BN3, bias folded) as ONE packed matmul on [h; h_next; h_prev; 1].
    # F-neighbours via XLU roll + per-batch boundary masks (seam aware when the
    # batch is folded into lanes).
    base = jax.lax.broadcasted_iota(jnp.int32, (cout, N), 1)         # 0..N-1
    pos = base if Bc == 1 else jnp.concatenate([base] * Bc, axis=1)  # (cout, L)
    h_prev = jnp.where(pos >= T, pltpu.roll(h, T, 1), 0.0)           # h[j-1]
    h_next = jnp.where(pos < N - T, pltpu.roll(h, L - T, 1), 0.0)    # h[j+1]

    x3 = jnp.concatenate([h, h_next, h_prev, ones],
                         axis=0).astype(cdtype)                      # (3cout+1, L)
    y3 = jnp.dot(w3_ref[...], x3, preferred_element_type=f32)        # (4cout, L)
    a3 = alphas[cout:]                                               # (4cout, 1)

    # Single dense, lane-wide store of the whole phase-major slab.
    out_ref[0] = jnp.where(y3 > 0, y3, a3 * y3).astype(out_ref.dtype)


# --------------------------------------------------------------------------
# Wrapper
# --------------------------------------------------------------------------
def _default_parallel_blocks(B):
    # v7x has 2 TensorCores per chip -> keep >=2 parallel grid points; on the
    # single-TC v5e/v6e fold the whole batch into the lane axis (1 grid step).
    try:
        two_tc = "v7" in jax.devices()[0].device_kind.lower()
    except Exception:
        two_tc = False
    return 2 if (two_tc and B > 1 and B % 2 == 0) else 1


def freq_upsampling_forward(fu, fd, p, *, parallel_blocks=None,
                            compute_dtype=jnp.float32, interleave_output=True):
    """fu, fd: (B, cin, F, T) (PyTorch NCHW).  Returns (B, cout, 4F, T)."""
    B, cin, F, T = fu.shape
    cout = p["w2f"].shape[0]
    N = F * T

    if parallel_blocks is None:
        parallel_blocks = _default_parallel_blocks(B)
    assert B % parallel_blocks == 0, (B, parallel_blocks)
    Bc = B // parallel_blocks
    L = Bc * N
    cd = compute_dtype

    def to_blocks(x):
        # (B, C, F, T) -> (blocks, C, Bc*F*T).  Free when Bc == 1; a small
        # input-side pass otherwise (inputs are a fraction of the output bytes).
        x = x.reshape(parallel_blocks, Bc, cin, N)
        x = jnp.transpose(x, (0, 2, 1, 3)).reshape(parallel_blocks, cin, L)
        return x.astype(cd)

    fu3 = to_blocks(fu)
    fd3 = to_blocks(fd)
    w1 = p["w1f"].astype(cd)
    w2 = p["w2f"].astype(cd)
    w3 = p["w3f"].astype(cd)
    alphas = p["alphas"].astype(jnp.float32)

    kernel = functools.partial(_freq_upsampling_kernel, F=F, T=T)

    out = pl.pallas_call(
        kernel,
        out_shape=jax.ShapeDtypeStruct((parallel_blocks, 4 * cout, L), cd),
        grid=(parallel_blocks,),
        in_specs=[
            pl.BlockSpec((1, cin, L), lambda i: (i, 0, 0)),          # fu
            pl.BlockSpec((1, cin, L), lambda i: (i, 0, 0)),          # fd
            pl.BlockSpec((cin, 2 * cin + 1), lambda i: (0, 0)),      # W1 (+bias col)
            pl.BlockSpec((cout, cin + 1), lambda i: (0, 0)),         # W2 (+bias col)
            pl.BlockSpec((4 * cout, 3 * cout + 1), lambda i: (0, 0)),# W3 packed taps
            pl.BlockSpec((5 * cout, 1), lambda i: (0, 0)),           # [a2; a3 x4]
        ],
        out_specs=pl.BlockSpec((1, 4 * cout, L), lambda i: (i, 0, 0)),
        compiler_params=pltpu.CompilerParams(
            dimension_semantics=("parallel",)),
    )(fu3, fd3, w1, w2, w3, alphas)

    if not interleave_output:
        # TODO(synk): a consumer taking this phase-major (blocks, 4*cout, Bc*F*T)
        # layout directly avoids the extra HBM pass of the interleave below.
        return out

    # Layout plumbing back to NCHW: (blk, p*cout+co, bc*N + f*T + t)
    #   -> (B, cout, 4*f + p, t)
    out = out.reshape(parallel_blocks, 4, cout, Bc, F, T)
    out = jnp.transpose(out, (0, 3, 2, 4, 1, 5)).reshape(B, cout, 4 * F, T)
    return out


# --------------------------------------------------------------------------
# Deterministic parameter construction (PyTorch-shaped), then folding
# --------------------------------------------------------------------------
def init_raw_params(key, cin, cout):
    ks = jax.random.split(key, 20)

    def nrm(k, shape, scale=0.3):
        return scale * jax.random.normal(k, shape, jnp.float32)

    return dict(
        w1=nrm(ks[0], (cin, 2 * cin, 1, 1)), b1=nrm(ks[1], (cin,)),
        bn1_g=1.0 + 0.1 * jax.random.normal(ks[2], (cin,)),
        bn1_b=nrm(ks[3], (cin,)), bn1_m=nrm(ks[4], (cin,)),
        bn1_v=jax.random.uniform(ks[5], (cin,), minval=0.5, maxval=1.5),
        w2=nrm(ks[6], (cout, cin, 1, 1)), b2=nrm(ks[7], (cout,)),
        bn2_g=1.0 + 0.1 * jax.random.normal(ks[8], (cout,)),
        bn2_b=nrm(ks[9], (cout,)), bn2_m=nrm(ks[10], (cout,)),
        bn2_v=jax.random.uniform(ks[11], (cout,), minval=0.5, maxval=1.5),
        a2=jnp.full((cout,), 0.25, jnp.float32),
        w3=nrm(ks[12], (cout, cout // 2, 7, 1)), b3=nrm(ks[13], (cout,)),
        bn3_g=1.0 + 0.1 * jax.random.normal(ks[14], (cout,)),
        bn3_b=nrm(ks[15], (cout,)), bn3_m=nrm(ks[16], (cout,)),
        bn3_v=jax.random.uniform(ks[17], (cout,), minval=0.5, maxval=1.5),
        a3=jnp.full((cout,), 0.25, jnp.float32),
    )


def fold_params(raw, cin, cout, groups=2):
    """Fold BN (eval mode) + biases into 3 fused matmul weights + packed alphas."""
    r = {k: np.asarray(v, np.float32) for k, v in raw.items()}

    # Stage 1a: Conv2d(2cin->cin, 1x1) + BN1; bias folded as extra column.
    s1 = r["bn1_g"] / np.sqrt(r["bn1_v"] + BN_EPS)
    w1 = r["w1"][:, :, 0, 0] * s1[:, None]                       # (cin, 2cin)
    b1 = (r["b1"] - r["bn1_m"]) * s1 + r["bn1_b"]
    w1f = np.concatenate([w1, b1[:, None]], axis=1)              # (cin, 2cin+1)

    # Stage 1b: Conv2d(cin->cout, 1x1) + BN2.
    s2 = r["bn2_g"] / np.sqrt(r["bn2_v"] + BN_EPS)
    w2 = r["w2"][:, :, 0, 0] * s2[:, None]
    b2 = (r["b2"] - r["bn2_m"]) * s2 + r["bn2_b"]
    w2f = np.concatenate([w2, b2[:, None]], axis=1)              # (cout, cin+1)

    # Stage 2: grouped ConvTranspose2d taps -> dense per-tap (co, ci) matrices
    # (block-diagonal over groups) with BN3 scale folded, then packed by output
    # phase p of o = 4j + p:
    #   p=0: w[2]@h[j] + w[6]@h[j-1]     p=1: w[3]@h[j]
    #   p=2: w[4]@h[j] + w[0]@h[j+1]     p=3: w[5]@h[j] + w[1]@h[j+1]
    s3 = r["bn3_g"] / np.sqrt(r["bn3_v"] + BN_EPS)
    cpg = cout // groups
    w3 = r["w3"][:, :, :, 0]                                     # (ci, cpg, 7)
    w3t = np.zeros((7, cout, cout), np.float32)                  # [k, co, ci]
    for ci in range(cout):
        g = ci // cpg
        for col in range(cpg):
            co = g * cpg + col
            w3t[:, co, ci] = w3[ci, col, :] * s3[co]
    b3 = (r["b3"] - r["bn3_m"]) * s3 + r["bn3_b"]                # (cout,)
    zero = np.zeros((cout, cout), np.float32)
    nxt = {2: w3t[0], 3: w3t[1]}
    prv = {0: w3t[6]}
    w3f = np.concatenate([
        np.concatenate([w3t[pph + 2], nxt.get(pph, zero), prv.get(pph, zero),
                        b3[:, None]], axis=1)
        for pph in range(4)], axis=0)                            # (4cout, 3cout+1)

    alphas = np.concatenate([r["a2"], np.tile(r["a3"], 4)])[:, None]  # (5cout, 1)

    return dict(w1f=jnp.asarray(w1f), w2f=jnp.asarray(w2f),
                w3f=jnp.asarray(w3f), alphas=jnp.asarray(alphas))


# --------------------------------------------------------------------------
# Pure numpy reference (PyTorch semantics, BN in eval mode)
# --------------------------------------------------------------------------
def reference_forward(fu, fd, raw, groups=2):
    fu = np.asarray(fu); fd = np.asarray(fd)
    r = {k: np.asarray(v) for k, v in raw.items()}

    def bn(x, g, b, m, v):
        return (x - m[None, :, None, None]) / np.sqrt(
            v[None, :, None, None] + BN_EPS) * g[None, :, None, None] \
            + b[None, :, None, None]

    def prelu(x, a):
        a = a[None, :, None, None]
        return np.where(x > 0, x, a * x)

    x = np.concatenate([fu, fd], axis=1)
    y = np.einsum('bcft,dc->bdft', x, r["w1"][:, :, 0, 0]) \
        + r["b1"][None, :, None, None]
    y = np.tanh(bn(y, r["bn1_g"], r["bn1_b"], r["bn1_m"], r["bn1_v"])) * fd
    y = np.einsum('bcft,dc->bdft', y, r["w2"][:, :, 0, 0]) \
        + r["b2"][None, :, None, None]
    y = prelu(bn(y, r["bn2_g"], r["bn2_b"], r["bn2_m"], r["bn2_v"]), r["a2"])

    B, C, F, T = y.shape
    cpg = C // groups
    Fo = (F - 1) * 4 - 2 * 2 + 7 + 1
    out = np.zeros((B, C, Fo, T), np.float32)
    w = r["w3"][:, :, :, 0]
    for c_in in range(C):
        g = c_in // cpg
        for col in range(cpg):
            c_out = g * cpg + col
            for i in range(F):
                for k in range(7):
                    o = i * 4 - 2 + k
                    if 0 <= o < Fo:
                        out[:, c_out, o, :] += y[:, c_in, i, :] * w[c_in, col, k]
    out += r["b3"][None, :, None, None]
    out = prelu(bn(out, r["bn3_g"], r["bn3_b"], r["bn3_m"], r["bn3_v"]), r["a3"])
    return out


# --------------------------------------------------------------------------
if __name__ == "__main__":
    B, cin, cout, F, T = 2, 4, 4, 16, 16
    key = jax.random.PRNGKey(0)
    k_fu, k_fd, k_p = jax.random.split(key, 3)
    fu = jax.random.normal(k_fu, (B, cin, F, T), jnp.float32)
    fd = jax.random.normal(k_fd, (B, cin, F, T), jnp.float32)

    raw = init_raw_params(k_p, cin, cout)
    params = fold_params(raw, cin, cout)
    ref = reference_forward(fu, fd, raw)

    # 1) f32, whole batch folded into the lane axis (v5e/v6e path: 1 grid step,
    #    512-wide lanes, seam-aware F shifts).
    out_fold = jax.block_until_ready(
        freq_upsampling_forward(fu, fd, params, parallel_blocks=1))
    assert out_fold.shape == (B, cout, 4 * F, T), out_fold.shape
    np.testing.assert_allclose(np.asarray(out_fold), ref, rtol=1e-4, atol=1e-4)

    # 2) f32, two "parallel" grid points (v7x two-TensorCore path).
    out_par = jax.block_until_ready(
        freq_upsampling_forward(fu, fd, params, parallel_blocks=2))
    np.testing.assert_allclose(np.asarray(out_par), ref, rtol=1e-4, atol=1e-4)

    # 3) bf16 MXU operands + bf16 HBM I/O (v6e/v7x roofline lever), f32 accum.
    out_bf16 = jax.block_until_ready(
        freq_upsampling_forward(fu, fd, params, parallel_blocks=1,
                                compute_dtype=jnp.bfloat16))
    np.testing.assert_allclose(np.asarray(out_bf16.astype(jnp.float32)), ref,
                               rtol=1e-1, atol=1e-1)

    print("KERNEL_OK")
</pallas_src>

<mosaic_0001>
module attributes {stable_mosaic.version = 11 : i64} {
  func.func @_freq_upsampling_kernel(%arg0: i32, %arg1: memref<1x4x512xf32, #tpu.memory_space<vmem>>, %arg2: memref<1x4x512xf32, #tpu.memory_space<vmem>>, %arg3: memref<4x9xf32, #tpu.memory_space<vmem>>, %arg4: memref<4x5xf32, #tpu.memory_space<vmem>>, %arg5: memref<16x13xf32, #tpu.memory_space<vmem>>, %arg6: memref<20x1xf32, #tpu.memory_space<vmem>>, %arg7: memref<1x16x512xf32, #tpu.memory_space<vmem>>) attributes {dimension_semantics = [#tpu.dimension_semantics<parallel>], iteration_bounds = array<i64: 1>, scalar_prefetch = 0 : i64, scratch_operands = 0 : i64, tpu.core_type = #tpu.core_type<tc>, window_params = [{transform_indices = @transform_0, window_bounds = array<i64: 1, 4, 512>}, {transform_indices = @transform_1, window_bounds = array<i64: 1, 4, 512>}, {pipeline_mode = #tpu.pipeline_mode<synchronous>, transform_indices = @transform_2, window_bounds = array<i64: 4, 9>}, {pipeline_mode = #tpu.pipeline_mode<synchronous>, transform_indices = @transform_3, window_bounds = array<i64: 4, 5>}, {pipeline_mode = #tpu.pipeline_mode<synchronous>, transform_indices = @transform_4, window_bounds = array<i64: 16, 13>}, {pipeline_mode = #tpu.pipeline_mode<synchronous>, transform_indices = @transform_5, window_bounds = array<i64: 20, 1>}, {transform_indices = @transform_6, window_bounds = array<i64: 1, 16, 512>}]} {
    %c0 = arith.constant 0 : index
    %c0_0 = arith.constant 0 : index
    %c0_1 = arith.constant 0 : index
    %0 = vector.load %arg1[%c0, %c0_0, %c0_1] : memref<1x4x512xf32, #tpu.memory_space<vmem>>, vector<1x4x512xf32>
    %1 = vector.shape_cast %0 : vector<1x4x512xf32> to vector<4x512xf32>
    %c0_2 = arith.constant 0 : index
    %c0_3 = arith.constant 0 : index
    %c0_4 = arith.constant 0 : index
    %2 = vector.load %arg2[%c0_2, %c0_3, %c0_4] : memref<1x4x512xf32, #tpu.memory_space<vmem>>, vector<1x4x512xf32>
    %3 = vector.shape_cast %2 : vector<1x4x512xf32> to vector<4x512xf32>
    %cst = arith.constant 1.000000e+00 : f32
    %4 = vector.broadcast %cst : f32 to vector<1x512xf32>
    %5 = tpu.concatenate %1, %3, %4 in 0 : vector<4x512xf32>, vector<4x512xf32>, vector<1x512xf32> -> vector<9x512xf32>
    %c0_5 = arith.constant 0 : index
    %c0_6 = arith.constant 0 : index
    %6 = vector.load %arg3[%c0_5, %c0_6] : memref<4x9xf32, #tpu.memory_space<vmem>>, vector<4x9xf32>
    %cst_7 = arith.constant dense<0.000000e+00> : vector<4x512xf32>
    %7 = tpu.matmul %6, %5, %cst_7 {dimension_numbers = #tpu.dot_dimension_numbers<[1], [0], [0], [1], [0, 0, 1, 1], [], []>} : vector<4x9xf32>, vector<9x512xf32>, vector<4x512xf32> -> vector<4x512xf32>
    %8 = math.tanh %7 : vector<4x512xf32>
    %9 = arith.mulf %8, %3 : vector<4x512xf32>
    %10 = tpu.concatenate %9, %4 in 0 : vector<4x512xf32>, vector<1x512xf32> -> vector<5x512xf32>
    %c0_8 = arith.constant 0 : index
    %c0_9 = arith.constant 0 : index
    %11 = vector.load %arg4[%c0_8, %c0_9] : memref<4x5xf32, #tpu.memory_space<vmem>>, vector<4x5xf32>
    %cst_10 = arith.constant dense<0.000000e+00> : vector<4x512xf32>
    %12 = tpu.matmul %11, %10, %cst_10 {dimension_numbers = #tpu.dot_dimension_numbers<[1], [0], [0], [1], [0, 0, 1, 1], [], []>} : vector<4x5xf32>, vector<5x512xf32>, vector<4x512xf32> -> vector<4x512xf32>
    %c0_11 = arith.constant 0 : index
    %c0_12 = arith.constant 0 : index
    %13 = vector.load %arg6[%c0_11, %c0_12] : memref<20x1xf32, #tpu.memory_space<vmem>>, vector<20x1xf32>
    %14 = vector.extract_strided_slice %13 {offsets = [0, 0], sizes = [4, 1], strides = [1, 1]} : vector<20x1xf32> to vector<4x1xf32>
    %cst_13 = arith.constant 0.000000e+00 : f32
    %15 = vector.broadcast %cst_13 : f32 to vector<4x512xf32>
    %16 = arith.cmpf ogt, %12, %15 : vector<4x512xf32>
    %17 = vector.broadcast %14 : vector<4x1xf32> to vector<4x512xf32>
    %18 = arith.mulf %17, %12 : vector<4x512xf32>
    %19 = arith.select %16, %12, %18 : vector<4x512xi1>, vector<4x512xf32>
    %20 = tpu.iota {dimensions = array<i32: 1>} : vector<4x256xi32>
    %21 = tpu.concatenate %20, %20 in 1 : vector<4x256xi32>, vector<4x256xi32> -> vector<4x512xi32>
    %c16_i32 = arith.constant 16 : i32
    %22 = vector.broadcast %c16_i32 : i32 to vector<4x512xi32>
    %23 = arith.cmpi sge, %21, %22 : vector<4x512xi32>
    %c16_i32_14 = arith.constant 16 : i32
    %24 = tpu.dynamic_rotate %19 by %c16_i32_14 dim 1 : vector<4x512xf32>, i32 -> vector<4x512xf32>
    %cst_15 = arith.constant 0.000000e+00 : f32
    %25 = vector.broadcast %cst_15 : f32 to vector<4x512xf32>
    %26 = arith.select %23, %24, %25 : vector<4x512xi1>, vector<4x512xf32>
    %c240_i32 = arith.constant 240 : i32
    %27 = vector.broadcast %c240_i32 : i32 to vector<4x512xi32>
    %28 = arith.cmpi slt, %21, %27 : vector<4x512xi32>
    %c496_i32 = arith.constant 496 : i32
    %29 = tpu.dynamic_rotate %19 by %c496_i32 dim 1 : vector<4x512xf32>, i32 -> vector<4x512xf32>
    %cst_16 = arith.constant 0.000000e+00 : f32
    %30 = vector.broadcast %cst_16 : f32 to vector<4x512xf32>
    %31 = arith.select %28, %29, %30 : vector<4x512xi1>, vector<4x512xf32>
    %32 = tpu.concatenate %19, %31, %26, %4 in 0 : vector<4x512xf32>, vector<4x512xf32>, vector<4x512xf32>, vector<1x512xf32> -> vector<13x512xf32>
    %c0_17 = arith.constant 0 : index
    %c0_18 = arith.constant 0 : index
    %33 = vector.load %arg5[%c0_17, %c0_18] : memref<16x13xf32, #tpu.memory_space<vmem>>, vector<16x13xf32>
    %cst_19 = arith.constant dense<0.000000e+00> : vector<16x512xf32>
    %34 = tpu.matmul %33, %32, %cst_19 {dimension_numbers = #tpu.dot_dimension_numbers<[1], [0], [0], [1], [0, 0, 1, 1], [], []>} : vector<16x13xf32>, vector<13x512xf32>, vector<16x512xf32> -> vector<16x512xf32>
    %35 = vector.extract_strided_slice %13 {offsets = [4, 0], sizes = [16, 1], strides = [1, 1]} : vector<20x1xf32> to vector<16x1xf32>
    %cst_20 = arith.constant 0.000000e+00 : f32
    %36 = vector.broadcast %cst_20 : f32 to vector<16x512xf32>
    %37 = arith.cmpf ogt, %34, %36 : vector<16x512xf32>
    %38 = vector.broadcast %35 : vector<16x1xf32> to vector<16x512xf32>
    %39 = arith.mulf %38, %34 : vector<16x512xf32>
    %40 = arith.select %37, %34, %39 : vector<16x512xi1>, vector<16x512xf32>
    %c0_21 = arith.constant 0 : index
    %c0_22 = arith.constant 0 : index
    %c0_23 = arith.constant 0 : index
    %41 = vector.load %arg7[%c0_21, %c0_22, %c0_23] : memref<1x16x512xf32, #tpu.memory_space<vmem>>, vector<1x16x512xf32>
    %42 = vector.shape_cast %41 : vector<1x16x512xf32> to vector<16x512xf32>
    %43 = vector.shape_cast %40 : vector<16x512xf32> to vector<1x16x512xf32>
    tpu.vector_store %arg7[%c0_21, %c0_22, %c0_23], %43 {strides = array<i32>} : memref<1x16x512xf32, #tpu.memory_space<vmem>>, vector<1x16x512xf32>,
    return
  }
  func.func @transform_0(%arg0: i32) -> (i32, i32, i32) {
    %c0_i32 = arith.constant 0 : i32
    %c0_i32_0 = arith.constant 0 : i32
    %c0_i32_1 = arith.constant 0 : i32
    return %arg0, %c0_i32, %c0_i32_0 : i32, i32, i32
  }
  func.func @transform_1(%arg0: i32) -> (i32, i32, i32) {
    %c0_i32 = arith.constant 0 : i32
    %c0_i32_0 = arith.constant 0 : i32
    %c0_i32_1 = arith.constant 0 : i32
    return %arg0, %c0_i32, %c0_i32_0 : i32, i32, i32
  }
  func.func @transform_2(%arg0: i32) -> (i32, i32) {
    %c0_i32 = arith.constant 0 : i32
    %c0_i32_0 = arith.constant 0 : i32
    %c0_i32_1 = arith.constant 0 : i32
    return %c0_i32, %c0_i32_0 : i32, i32
  }
  func.func @transform_3(%arg0: i32) -> (i32, i32) {
    %c0_i32 = arith.constant 0 : i32
    %c0_i32_0 = arith.constant 0 : i32
    %c0_i32_1 = arith.constant 0 : i32
    return %c0_i32, %c0_i32_0 : i32, i32
  }
  func.func @transform_4(%arg0: i32) -> (i32, i32) {
    %c0_i32 = arith.constant 0 : i32
    %c0_i32_0 = arith.constant 0 : i32
    %c0_i32_1 = arith.constant 0 : i32
    return %c0_i32, %c0_i32_0 : i32, i32
  }
  func.func @transform_5(%arg0: i32) -> (i32, i32) {
    %c0_i32 = arith.constant 0 : i32
    %c0_i32_0 = arith.constant 0 : i32
    %c0_i32_1 = arith.constant 0 : i32
    return %c0_i32, %c0_i32_0 : i32, i32
  }
  func.func @transform_6(%arg0: i32) -> (i32, i32, i32) {
    %c0_i32 = arith.constant 0 : i32
    %c0_i32_0 = arith.constant 0 : i32
    %c0_i32_1 = arith.constant 0 : i32
    return %arg0, %c0_i32, %c0_i32_0 : i32, i32, i32
  }
}

</mosaic_0001>

<bundles_post_ra>
// kernel: tpu_custom_call.1
= control target key start
LH: loop header
LB: loop body
LE: loop exit
PB: predicated region body
PF: predicated region fallthrough
CT: control target
= control target key end

     0   :  { %11 = vsyncpa [#allocation3], 0  ;;  %s1142_s0 = inlined_call_operand.vmem [shape: f32[1,4,512], index: 0, kind: input, shape index: {}]   ;;  %s1143_s1 = inlined_call_operand.hbm [shape: f32[1,4,512], index: 1, kind: input, shape index: {}]   ;;  %s1144_s2 = inlined_call_operand.hbm [shape: f32[4,9], index: 2, kind: input, shape index: {}]   ;;  %s1145_s3 = inlined_call_operand.vmem [shape: f32[4,5], index: 3, kind: input, shape index: {}]   ;;  %s1146_s4 = inlined_call_operand.vmem [shape: f32[16,13], index: 4, kind: input, shape index: {}]   ;;  %s1147_s5 = inlined_call_operand.vmem [shape: f32[20,1], index: 5, kind: input, shape index: {}]   ;;  %s1148_s6 = inlined_call_operand.hbm [shape: f32[1,16,512], index: 6, kind: output, shape index: {}]  }
   0x1   :  { %12 = vsyncpa [#allocation6], 0 }
   0x2   :  { %13 = vsyncpa [#allocation4], 0  ;;  %s951_s21 = smov [#allocation2]   ;;  %s952_s23 = smov [#allocation5]  }
   0x3   :  { %s22_s22 = sshll.u32 %s951_s21, 4  ;;  %s32_s24 = sshll.u32 %s952_s23, 4  ;;  %s23_s22 = int_to_ptr.vmem [resolvable:$true] %s22_s22  ;;  %s33_s24 = int_to_ptr.vmem [resolvable:$true] %s32_s24 }
   0x4   :  { %s879_s27 = scalar_lea.hbm %s1143_s1, 256 }
   0x5   :  { %p880_p0 = scmp.ne.s32.totalorder %s1143_s1, %s879_s27  ;;  %p883_p1 = scmp.lt.u32.totalorder %s879_s27, %s1143_s1 }
   0x7   :  { %p885_p2 = pnand %p883_p1, %p880_p0 }
   0x9   :  { %888 = shalt.err (!%p885_p2)
}
   0xa   :  { %s889_s8 = scalar_lea.vmem %s23_s22, 256  ;;  %p894_p4 = scmp.lt.s32.totalorder %s23_s22, %s23_s22 }
   0xb   :  { %p890_p3 = scmp.ne.s32.totalorder %s23_s22, %s889_s8  ;;  %p895_p5 = scmp.lt.s32.totalorder %s889_s8, %s889_s8 }
   0xd   :  { %p896_p6 = por %p895_p5, %p894_p4 }
   0xf   :  { %p897_p7 = pnand %p896_p6, %p890_p3 }
  0x11   :  { %900 = shalt.err (!%p897_p7)
}
  0x12   :  { %25 = dma.hbm_to_vmem [thread:$0]  %s1143_s1, 256, %s23_s22, [#allocation3]  }
  0x13   :  { %s901_s13 = scalar_lea.hbm %s1144_s2, 64 }
  0x14   :  { %p902_p8 = scmp.ne.s32.totalorder %s1144_s2, %s901_s13  ;;  %p905_p9 = scmp.lt.u32.totalorder %s901_s13, %s1144_s2 }
  0x16   :  { %p907_p10 = pnand %p905_p9, %p902_p8 }
  0x18   :  { %910 = shalt.err (!%p907_p10)
}
  0x19   :  { %s911_s18 = scalar_lea.vmem %s33_s24, 64  ;;  %p916_p12 = scmp.lt.s32.totalorder %s33_s24, %s33_s24 }
  0x1a   :  { %p912_p11 = scmp.ne.s32.totalorder %s33_s24, %s911_s18  ;;  %p917_p13 = scmp.lt.s32.totalorder %s911_s18, %s911_s18 }
  0x1c   :  { %p918_p0 = por %p917_p13, %p916_p12 }
  0x1e   :  { %p919_p1 = pnand %p918_p0, %p912_p11 }
  0x20   :  { %922 = shalt.err (!%p919_p1)
}
  0x21   :  { %35 = dma.hbm_to_vmem [thread:$0]  %s1144_s2, 64, %s33_s24, [#allocation6]  }
  0x22   :  { %945 = dma.done.wait [#allocation3], 256  }
  0x23   :  { %946 = vsyncadd [#allocation3], 4294967040 }
  0x24   :  { %947 = dma.done.wait [#allocation6], 64  }
  0x25   :  { %948 = vsyncadd [#allocation6], 4294967232  ;;  %v953_v0 = vmov 0.0   ;;  %v48_v1 = vld [vmem:[%s1142_s0] sm:$0xff]  ;;  %vm64_vm0 = vcmask 1043456   ;;  %vm74_vm1 = vcmask 1040384   ;;  %v416_v57 = vlaneseq }
  0x26   :  { %142 = vmatprep.mubr.f32.mxu0 %v953_v0  ;;  %213 = vmatprep.mubr.f32.mxu1 %v953_v0  ;;  %v50_v2 = vld [vmem:[#allocation2] sm:$0xff]  ;;  %v49_v3 = vld [vmem:[%s1142_s0 + $0x8] sm:$0xff]  ;;  %v54_v4 = vcombine.high %v48_v1, %v48_v1  ;;  %vm954_vm2 = vmmov 1   ;;  %v955_v12 = vmov 1.0   ;;  %v69_v18 = vld [vmem:[#allocation5] sm:$0xf] }
  0x27   :  { %v51_v5 = vld [vmem:[#allocation2 + $0x8] sm:$0xff]  ;;  %v55_v6 = vcombine.high %v49_v3, %v49_v3  ;;  %v60_v7 = vcombine.low %v50_v2, %v50_v2  ;;  %vm809_vm3 = vmpackc.low %vm74_vm1, %vm954_vm2  ;;  %vm70_vm4 = vcmask 72704   ;;  %v396_v19 = vld [vmem:[%s1147_s5] sm:$0xff]  ;;  %v956_v20 = vmov 0   ;;  %s958_s26 = smov 16  }
  0x28   :  { %v61_v8 = vcombine.low %v51_v5, %v51_v5  ;;  %v66_v9 = vsel %vm64_vm0, %v54_v4, %v50_v2  ;;  %843 = vset.pattern.permute.xlu0 %v956_v20  ;;  %864 = vset.pattern.permute.xlu1 %v956_v20  ;;  %v224_v25 = vcombine.high %v50_v2, %v50_v2  ;;  %vm241_vm5 = vcmask 1044480   ;;  %v236_v36 = vld [vmem:[%s1145_s3] sm:$0xf]  ;;  %s957_s3 = smov 112   ;;  %v398_v55 = vld [vmem:[%s1147_s5 + $0x10] sm:$0xf] }
  0x29   :  { %v68_v10 = vsel %vm64_vm0, %v55_v6, %v51_v5  ;;  %v65_v11 = vsel %vm64_vm0, %v48_v1, %v60_v7  ;;  %v808_v13 = vpack.c.bf16 %v955_v12, %v66_v9  ;;  %405 = vperm.xlu0 %843, %v396_v19   ;;  %v225_v27 = vcombine.high %v51_v5, %v51_v5  ;;  %v397_v56 = vld [vmem:[%s1147_s5 + $0x8] sm:$0xff]  ;;  %vm821_vm15 = vmpackc.low %vm241_vm5, %vm954_vm2 }
  0x2a   :  { %v814_v14 = vpack.c.bf16 %v955_v12, %v68_v10  ;;  %v811_v15 = vpack.c.bf16 %v955_v12, %v65_v11  ;;  %v67_v16 = vsel %vm64_vm0, %v49_v3, %v61_v8  ;;  %vm237_vm6 = vcmask 39936  }
  0x2b   :  { %v817_v17 = vpack.c.bf16 %v955_v12, %v67_v16  ;;  %810 = vmatprep.subr.msk.bf16.mxu0 %vm809_vm3, %v808_v13  ;;  %v417_v58 = vand.u32 127, %v416_v57  ;;  %vm479_vm1 = vcmask 105472  }
  0x2c   :  { %816 = vmatprep.subr.msk.bf16.mxu1 %vm809_vm3, %v814_v14  ;;  %813 = vmatpush1.bf16.msk.msra.mxu0 %vm809_vm3, %v811_v15 }
  0x2d   :  { %819 = vmatpush1.bf16.msk.msra.mxu1 %vm809_vm3, %v817_v17  ;;  %v418_v59 = vadd.s32 128, %v417_v58  ;;  %vm448_vm11 = vcmp.lt.s32.totalorder %v417_v58, 112  ;;  %vm429_vm13 = vcmp.lt.s32.totalorder %v417_v58, 16  ;;  %vm419_vm14 = vcmp.ge.s32.totalorder %v417_v58, 16 }
  0x2f   :  { %790 = vmatmul.mubr.msk.f32.vlgmr.msra.gmra.mrb[0].mxu0 %vm70_vm4, %v69_v18  ;;  %vm439_vm12 = vcmp.lt.s32.totalorder %v418_v59, 240 }
  0x30   :  { %793 = vmatmul.mubr.msk.f32.vlgmr.msra.gmra.mrb[0].mxu1 %vm70_vm4, %v69_v18  ;;  %318 = vmatprep.mubr.f32.mxu0 %v953_v0 }
  0x31   :  { %389 = vmatprep.mubr.f32.mxu1 %v953_v0 }
  0xa8   :  { %v1052_v40 = vpop.permute.xlu0 %405 }
 0x102   :  { %v144_v21 = vpop.f32.mrb[0].mxu0 }
 0x103   :  { %v215_v22 = vpop.f32.mrb[0].mxu1  ;;  %871 = vtanh.f32 %v144_v21  ;;  %v146_v23 = vpop.f32.mrb[1].mxu0 }
 0x104   :  { %v217_v24 = vpop.f32.mrb[1].mxu1  ;;  %873 = vtanh.f32 %v215_v22 }
 0x105   :  { %875 = vtanh.f32 %v146_v23 }
 0x106   :  { %877 = vtanh.f32 %v217_v24 }
 0x10d   :  { %v872_v26 = vpop.eup %871 }
 0x10e   :  { %v874_v28 = vpop.eup %873  ;;  %v228_v30 = vmul.f32 %v872_v26, %v50_v2 }
 0x10f   :  { %v876_v29 = vpop.eup %875  ;;  %v230_v33 = vmul.f32 %v874_v28, %v51_v5 }
 0x110   :  { %v878_v31 = vpop.eup %877  ;;  %v229_v32 = vmul.f32 %v876_v29, %v224_v25  ;;  %v232_v38 = vsel %vm64_vm0, %v228_v30, 1.0 }
 0x111   :  { %v231_v34 = vmul.f32 %v878_v31, %v225_v27  ;;  %v234_v39 = vsel %vm64_vm0, %v230_v33, 1.0 }
 0x112   :  { %v233_v35 = vsel %vm64_vm0, %v229_v32, 1.0 }
 0x113   :  { %794 = vmatprep.subr.msk.mxu0 %vm241_vm5, %v233_v35  ;;  %v235_v37 = vsel %vm64_vm0, %v231_v34, 1.0 }
 0x114   :  { %797 = vmatprep.subr.msk.mxu1 %vm241_vm5, %v235_v37  ;;  %795 = vmatpush1.msk.msra.mxu0 %vm241_vm5, %v232_v38  ;;  %v477_v37 = vld [vmem:[%s1146_s4] sm:$0xff]  ;;  %v478_v38 = vld [vmem:[%s1146_s4 + $0x8] sm:$0xff]  ;;  %s959_s4 = smov [#allocation7]  }
 0x115   :  { %798 = vmatpush1.msk.msra.mxu1 %vm241_vm5, %v234_v39  ;;  %796 = vmatmul.mubr.msk.f32.vlgmr.msra.gmra.mrb[2].mxu0 %vm237_vm6, %v236_v36  ;;  %s775_s10 = sshll.u32 %s959_s4, 4  ;;  %s776_s10 = int_to_ptr.vmem [resolvable:$true] %s775_s10 }
 0x116   :  { %799 = vmatmul.mubr.msk.f32.vlgmr.msra.gmra.mrb[2].mxu1 %vm237_vm6, %v236_v36  ;;  %562 = vmatprep.mubr.f32.mxu0 %v953_v0  ;;  %s923_s11 = scalar_lea.vmem %s776_s10, 1024  ;;  %p928_p3 = scmp.lt.s32.totalorder %s776_s10, %s776_s10 }
 0x117   :  { %639 = vmatprep.mubr.f32.mxu1 %v953_v0  ;;  %p924_p2 = scmp.ne.s32.totalorder %s776_s10, %s923_s11  ;;  %p929_p4 = scmp.lt.s32.totalorder %s923_s11, %s923_s11 }
 0x119   :  { %p930_p5 = por %p929_p4, %p928_p3 }
 0x11b   :  { %p931_p6 = pnand %p930_p5, %p924_p2 }
 0x1e8   :  { %v320_v41 = vpop.f32.mrb[2].mxu0 }
 0x1e9   :  { %vm399_vm7 = vcmp.gt.f32.partialorder %v320_v41, 0.0  ;;  %v408_v42 = vmul.f32 %v1052_v40, %v320_v41  ;;  %v391_v43 = vpop.f32.mrb[2].mxu1  ;;  %v322_v44 = vpop.f32.mrb[3].mxu0 }
 0x1ea   :  { %vm401_vm8 = vcmp.gt.f32.partialorder %v391_v43, 0.0  ;;  %v410_v45 = vmul.f32 %v1052_v40, %v391_v43  ;;  %vm400_vm9 = vcmp.gt.f32.partialorder %v322_v44, 0.0  ;;  %v409_v46 = vmul.f32 %v1052_v40, %v322_v44  ;;  %v393_v47 = vpop.f32.mrb[3].mxu1 }
 0x1eb   :  { %v412_v48 = vsel %vm399_vm7, %v320_v41, %v408_v42  ;;  %vm402_vm10 = vcmp.gt.f32.partialorder %v393_v47, 0.0  ;;  %v411_v49 = vmul.f32 %v1052_v40, %v393_v47 }
 0x1ec   :  { %v414_v50 = vsel %vm401_vm8, %v391_v43, %v410_v45  ;;  %v413_v51 = vsel %vm400_vm9, %v322_v44, %v409_v46 }
 0x1ed   :  { %v415_v52 = vsel %vm402_vm10, %v393_v47, %v411_v49  ;;  %v844_v53 = vpack.i.bf16 %v413_v51, %v412_v48 }
 0x1ee   :  { %v849_v54 = vpack.i.bf16 %v415_v52, %v414_v50 }
 0x1ef   :  { %845 = vrot.lane.b32.xlu0 %v844_v53, %s957_s3 }
 0x1f0   :  { %850 = vrot.lane.b32.xlu1 %v849_v54, %s957_s3 }
 0x1f3   :  { %860 = vrot.lane.b32.xlu0 %v849_v54, %s958_s26 }
 0x1f4   :  { %855 = vrot.lane.b32.xlu1 %v844_v53, %s958_s26 }
 0x1f7   :  { %667 = vperm.xlu0 %843, %v398_v55  }
 0x1f8   :  { %662 = vperm.xlu1 %864, %v397_v56  }
 0x261   :  { %v846_v60 = vpop.permute.xlu0 %845 }
 0x262   :  { %v851_v61 = vpop.permute.xlu1 %850  ;;  %v848_v62 = vunpack.i.h.bf16 %v846_v60  ;;  %v847_v63 = vunpack.i.l.bf16 %v846_v60 }
 0x263   :  { %v853_v1 = vunpack.i.h.bf16 %v851_v61  ;;  %v852_v2 = vunpack.i.l.bf16 %v851_v61 }
 0x264   :  { %v451_v3 = vsel %vm448_vm11, %v847_v63, %v848_v62 }
 0x265   :  { %v449_v4 = vsel %vm448_vm11, %v852_v2, %v853_v1  ;;  %v450_v5 = vsel %vm448_vm11, %v848_v62, %v852_v2  ;;  %v452_v6 = vsel %vm448_vm11, %v853_v1, %v847_v63  ;;  %v461_v7 = vrot.slane %v451_v3, 4  ;;  %v861_v8 = vpop.permute.xlu0 %860 }
 0x266   :  { %v454_v9 = vsel %vm439_vm12, %v450_v5, 0.0  ;;  %v456_v10 = vsel %vm439_vm12, %v452_v6, 0.0  ;;  %v856_v11 = vpop.permute.xlu1 %855  ;;  %v863_v12 = vunpack.i.h.bf16 %v861_v8  ;;  %v463_v17 = vrot.slane %v449_v4, 4 }
 0x267   :  { %v462_v13 = vrot.slane %v454_v9, 4  ;;  %v464_v14 = vrot.slane %v456_v10, 4  ;;  %v858_v15 = vunpack.i.h.bf16 %v856_v11  ;;  %v857_v16 = vunpack.i.l.bf16 %v856_v11 }
 0x268   :  { %v862_v18 = vunpack.i.l.bf16 %v861_v8  ;;  %v469_v19 = vsel %vm64_vm0, %v412_v48, %v461_v7  ;;  %v471_v32 = vsel %vm64_vm0, %v414_v50, %v463_v17 }
 0x269   :  { %v432_v20 = vsel %vm429_vm13, %v857_v16, %v858_v15  ;;  %v433_v21 = vsel %vm429_vm13, %v863_v12, %v857_v16  ;;  %v470_v22 = vsel %vm64_vm0, %v413_v51, %v462_v13  ;;  %v472_v23 = vsel %vm64_vm0, %v415_v52, %v464_v14 }
 0x26a   :  { %v474_v24 = vsel %vm64_vm0, %v432_v20, 1.0  ;;  %v434_v25 = vsel %vm419_vm14, %v433_v21, 0.0  ;;  %v430_v26 = vsel %vm429_vm13, %v862_v18, %v863_v12  ;;  %v431_v27 = vsel %vm429_vm13, %v858_v15, %v862_v18 }
 0x26b   :  { %v473_v28 = vsel %vm64_vm0, %v434_v25, 1.0  ;;  %v436_v29 = vsel %vm419_vm14, %v431_v27, 0.0  ;;  %v476_v30 = vsel %vm64_vm0, %v430_v26, 1.0  ;;  %v820_v31 = vpack.c.bf16 %v474_v24, %v470_v22 }
 0x26c   :  { %v475_v33 = vsel %vm64_vm0, %v436_v29, 1.0  ;;  %v823_v34 = vpack.c.bf16 %v473_v28, %v469_v19  ;;  %v826_v35 = vpack.c.bf16 %v476_v30, %v472_v23 }
 0x26d   :  { %v829_v36 = vpack.c.bf16 %v475_v33, %v471_v32  ;;  %822 = vmatprep.subr.msk.bf16.mxu0 %vm821_vm15, %v820_v31 }
 0x26e   :  { %828 = vmatprep.subr.msk.bf16.mxu1 %vm821_vm15, %v826_v35  ;;  %825 = vmatpush1.bf16.msk.msra.mxu0 %vm821_vm15, %v823_v34 }
 0x26f   :  { %831 = vmatpush1.bf16.msk.msra.mxu1 %vm821_vm15, %v829_v36 }
 0x271   :  { %802 = vmatmul.mubr.msk.f32.vlgmr.msra.gmra.mrb[4].mxu0 %vm479_vm1, %v477_v37 }
 0x272   :  { %806 = vmatmul.mubr.msk.f32.vlgmr.msra.gmra.mrb[4].mxu1 %vm479_vm1, %v477_v37  ;;  %568 = vmatprep.mubr.f32.mxu0 %v953_v0 }
 0x273   :  { %645 = vmatprep.mubr.f32.mxu1 %v953_v0 }
 0x275   :  { %803 = vmatmul.mubr.msk.f32.gmra.mrb[6].mxu0 %vm479_vm1, %v478_v38 }
 0x276   :  { %807 = vmatmul.mubr.msk.f32.gmra.mrb[6].mxu1 %vm479_vm1, %v478_v38  ;;  %v668_v54 = vpop.permute.xlu0 %667 }
 0x277   :  { %v663_v61 = vpop.permute.xlu1 %662 }
 0x344   :  { %v1088_v39 = vpop.f32.mrb[4].mxu0 }
 0x345   :  { %v678_v41 = vrot.slane %v1088_v39, 4  ;;  %v1091_v42 = vpop.f32.mrb[4].mxu1  ;;  %v1093_v43 = vpop.f32.mrb[5].mxu0  ;;  %vm652_vm2 = vcmp.gt.f32.partialorder %v1088_v39, 0.0 }
 0x346   :  { %v680_v44 = vrot.slane %v1091_v42, 4  ;;  %v679_v45 = vrot.slane %v1093_v43, 4  ;;  %v643_v46 = vpop.f32.mrb[5].mxu1  ;;  %vm653_vm3 = vcmp.gt.f32.partialorder %v1093_v43, 0.0  ;;  %vm654_vm4 = vcmp.gt.f32.partialorder %v1091_v42, 0.0 }
 0x347   :  { %v702_v47 = vmul.f32 %v678_v41, %v1052_v40  ;;  %v681_v48 = vrot.slane %v643_v46, 4  ;;  %vm655_vm5 = vcmp.gt.f32.partialorder %v643_v46, 0.0 }
 0x348   :  { %v704_v0 = vmul.f32 %v680_v44, %v1052_v40  ;;  %v570_v49 = vpop.f32.mrb[6].mxu0  ;;  %v703_v50 = vmul.f32 %v679_v45, %v1052_v40 }
 0x349   :  { %v682_v51 = vrot.slane %v570_v49, 4  ;;  %v647_v52 = vpop.f32.mrb[6].mxu1  ;;  %v572_v53 = vpop.f32.mrb[7].mxu0  ;;  %v726_v57 = vrot.slane %v702_v47, 4  ;;  %v705_v58 = vmul.f32 %v681_v48, %v1052_v40  ;;  %vm656_vm6 = vcmp.gt.f32.partialorder %v570_v49, 0.0 }
 0x34a   :  { %v686_v55 = vrot.slane %v647_v52, 4  ;;  %v649_v56 = vpop.f32.mrb[7].mxu1  ;;  %v684_v60 = vrot.slane %v572_v53, 4  ;;  %v732_v62 = vrot.slane %v704_v0, 4  ;;  %v729_v3 = vrot.slane %v703_v50, 4 }
 0x34b   :  { %v710_v59 = vmul.f32 %v682_v51, %v668_v54  ;;  %v688_v1 = vrot.slane %v649_v56, 4  ;;  %v683_v2 = vsel %vm64_vm0, %v678_v41, %v682_v51  ;;  %vm658_vm7 = vcmp.gt.f32.partialorder %v647_v52, 0.0 }
 0x34c   :  { %v712_v63 = vmul.f32 %v686_v55, %v668_v54  ;;  %v711_v4 = vmul.f32 %v684_v60, %v668_v54  ;;  %v685_v5 = vsel %vm64_vm0, %v679_v45, %v684_v60  ;;  %v687_v6 = vsel %vm64_vm0, %v680_v44, %v686_v55 }
 0x34d   :  { %v738_v7 = vrot.slane %v710_v59, 4  ;;  %v713_v40 = vmul.f32 %v688_v1, %v668_v54  ;;  %v689_v8 = vsel %vm64_vm0, %v681_v48, %v688_v1  ;;  %v706_v9 = vmul.f32 %v683_v2, %v663_v61 }
 0x34e   :  { %v740_v10 = vrot.slane %v711_v4, 4  ;;  %v707_v11 = vmul.f32 %v685_v5, %v663_v61  ;;  %v708_v12 = vmul.f32 %v687_v6, %v663_v61  ;;  %v709_v13 = vmul.f32 %v689_v8, %v663_v61 }
 0x34f   :  { %v742_v14 = vrot.slane %v712_v63, 4  ;;  %v744_v15 = vrot.slane %v713_v40, 4  ;;  %v727_v16 = vrot.slane %v706_v9, 4  ;;  %v735_v17 = vrot.slane %v705_v58, 4 }
 0x350   :  { %v730_v18 = vrot.slane %v707_v11, 4  ;;  %v733_v19 = vrot.slane %v708_v12, 4  ;;  %v736_v20 = vrot.slane %v709_v13, 4  ;;  %vm657_vm8 = vcmp.gt.f32.partialorder %v572_v53, 0.0 }
 0x351   :  { %vm659_vm9 = vcmp.gt.f32.partialorder %v649_v56, 0.0  ;;  %v728_v21 = vsel %vm64_vm0, %v726_v57, %v727_v16  ;;  %v739_v22 = vsel %vm64_vm0, %v727_v16, %v738_v7 }
 0x352   :  { %v731_v23 = vsel %vm64_vm0, %v729_v3, %v730_v18  ;;  %v734_v24 = vsel %vm64_vm0, %v732_v62, %v733_v19  ;;  %v737_v25 = vsel %vm64_vm0, %v735_v17, %v736_v20  ;;  %v741_v26 = vsel %vm64_vm0, %v730_v18, %v740_v10 }
 0x353   :  { %v743_v27 = vsel %vm64_vm0, %v733_v19, %v742_v14  ;;  %v745_v28 = vsel %vm64_vm0, %v736_v20, %v744_v15  ;;  %v754_v29 = vsel %vm652_vm2, %v1088_v39, %v728_v21  ;;  %v755_v30 = vsel %vm653_vm3, %v1093_v43, %v731_v23 }
 0x354   :  { %v756_v31 = vsel %vm654_vm4, %v1091_v42, %v734_v24  ;;  %v757_v32 = vsel %vm655_vm5, %v643_v46, %v737_v25  ;;  %v758_v33 = vsel %vm656_vm6, %v570_v49, %v739_v22  ;;  %v759_v34 = vsel %vm657_vm8, %v572_v53, %v741_v26  ;;  %762 = vst [vmem:[#allocation7] sm:$0xff] %v754_v29 }
 0x355   :  { %763 = vst [vmem:[#allocation7 + $0x8] sm:$0xff] %v755_v30  ;;  %v760_v35 = vsel %vm658_vm7, %v647_v52, %v743_v27  ;;  %v761_v36 = vsel %vm659_vm9, %v649_v56, %v745_v28  ;;  %764 = vst [vmem:[#allocation7 + $0x10] sm:$0xff] %v756_v31 }
 0x356   :  { %765 = vst [vmem:[#allocation7 + $0x18] sm:$0xff] %v757_v32  ;;  %766 = vst [vmem:[#allocation7 + $0x20] sm:$0xff] %v758_v33 }
 0x357   :  { %767 = vst [vmem:[#allocation7 + $0x28] sm:$0xff] %v759_v34  ;;  %768 = vst [vmem:[#allocation7 + $0x30] sm:$0xff] %v760_v35 }
 0x358   :  { %769 = vst [vmem:[#allocation7 + $0x38] sm:$0xff] %v761_v36 }
 0x359   :  { %934 = shalt.err (!%p931_p6)
}
 0x35a   :  { %s935_s14 = scalar_lea.hbm %s1148_s6, 1024 }
 0x35b   :  { %p936_p7 = scmp.ne.s32.totalorder %s1148_s6, %s935_s14  ;;  %p939_p8 = scmp.lt.u32.totalorder %s935_s14, %s1148_s6 }
 0x35d   :  { %p941_p9 = pnand %p939_p8, %p936_p7 }
 0x35f   :  { %944 = shalt.err (!%p941_p9)
}
 0x360   :  { %s960_s1 = smov 512   ;;  %s961_s19 = smov 32  }
 0x361   :  { %781 = dma.vmem_to_hbm [thread:$0]  %s776_s10, 1024, %s1148_s6, [#allocation4], %s960_s1, %s960_s1, %s961_s19  }
 0x362   :  { %949 = dma.done.wait [#allocation4], 1024  }
 0x363   :  { %950 = vsyncadd [#allocation4], 4294966272 }
 0x364   :  { %785 = vsyncpa [#allocation3], 1 }
 0x365   :  { %786 = vsyncpa [#allocation6], 1 }
 0x366   :  { %787 = vsyncpa [#allocation4], 1 }

</bundles_post_ra>
